<compile_context>
chip_gen: v7x
topology: tpu7x:2x2x1
jax: 0.10.0
libtpu: 0.0.40
codegen_flags: <defaults>
</compile_context>

<pallas_src>
import functools

import jax
import jax.numpy as jnp
from jax.experimental import pallas as pl
from jax.experimental.pallas import tpu as pltpu


def _round_up(x, m):
    return ((x + m - 1) // m) * m


# ---------------------------------------------------------------------------
# Kernels
# ---------------------------------------------------------------------------

def _pairwise_kernel(s_ref, r_ref, off_ref, o_ref, out_ref, *, alpha):
    """s/r/off/o refs: (TB, D); out_ref: (TB, 1).  Fully fused box score."""
    s = s_ref[...].astype(jnp.float32)
    r = r_ref[...].astype(jnp.float32)
    off = jnp.maximum(off_ref[...].astype(jnp.float32), 0.0)   # relu(query_offset)
    o = o_ref[...].astype(jnp.float32)

    qc = s + r
    qmax = qc + off
    qmin = qc - off

    d_out = jnp.maximum(o - qmax, 0.0) + jnp.maximum(qmin - o, 0.0)
    d_in = jnp.abs(qc - jnp.minimum(qmax, jnp.maximum(qmin, o)))

    score = -jnp.sum(d_out + alpha * d_in, axis=-1, keepdims=True)   # f32 accumulate
    out_ref[...] = score.astype(out_ref.dtype)


def _all_entities_kernel(qc_ref, qmax_ref, qmin_ref, e_ref, out_ref, acc_ref, *, alpha):
    """qc/qmax/qmin refs: (TD, TB) transposed query tiles.
       e_ref: (TD, TN) transposed entity tile.
       out_ref: (TB, TN); acc_ref: (TB, TN) f32 scratch accumulator.

    score[b, n] accumulated over the D (grid axis 2) reduction.  The reduction
    is a sum over the LEADING axis of the (TD, TB, TN) broadcast, which lowers
    to VPU adds (no cross-lane reduction, output stays lane-dense in N).
    """
    k = pl.program_id(2)

    @pl.when(k == 0)
    def _():
        acc_ref[...] = jnp.zeros_like(acc_ref)

    e = e_ref[...].astype(jnp.float32)[:, None, :]          # (TD, 1, TN)
    qc = qc_ref[...].astype(jnp.float32)[:, :, None]        # (TD, TB, 1)
    qmax = qmax_ref[...].astype(jnp.float32)[:, :, None]
    qmin = qmin_ref[...].astype(jnp.float32)[:, :, None]

    d_out = jnp.maximum(e - qmax, 0.0) + jnp.maximum(qmin - e, 0.0)   # (TD, TB, TN)
    d_in = jnp.abs(qc - jnp.minimum(qmax, jnp.maximum(qmin, e)))

    acc_ref[...] += jnp.sum(d_out + alpha * d_in, axis=0)             # (TB, TN)

    @pl.when(k == pl.num_programs(2) - 1)
    def _():
        out_ref[...] = (-acc_ref[...]).astype(out_ref.dtype)


# ---------------------------------------------------------------------------
# Wrappers
# ---------------------------------------------------------------------------

def query2box_score_pairwise(s_center, r_center, r_offset, o_center, *, alpha):
    """All inputs (B, D) -> scores (B,)."""
    B, D = s_center.shape

    if B <= 512:
        B_pad = _round_up(B, 8)
        TB = B_pad
    else:
        B_pad = _round_up(B, 512)
        TB = 512

    def pad_rows(x):
        return jnp.pad(x, ((0, B_pad - B), (0, 0))) if B_pad != B else x

    s_p = pad_rows(s_center)
    r_p = pad_rows(r_center)
    off_p = pad_rows(r_offset)
    o_p = pad_rows(o_center)

    in_spec = pl.BlockSpec((TB, D), lambda i: (i, 0))
    out = pl.pallas_call(
        functools.partial(_pairwise_kernel, alpha=alpha),
        out_shape=jax.ShapeDtypeStruct((B_pad, 1), jnp.float32),
        grid=(B_pad // TB,),
        in_specs=[in_spec, in_spec, in_spec, in_spec],
        out_specs=pl.BlockSpec((TB, 1), lambda i: (i, 0)),
        compiler_params=pltpu.CompilerParams(
            dimension_semantics=("parallel",)),
    )(s_p, r_p, off_p, o_p)
    return out[:B, 0]


def query2box_score_all_entities(query_center, query_max, query_min,
                                 entity_weight, *, alpha):
    """query_*: (B, D); entity_weight: (N, D) -> scores (B, N)."""
    B, D = query_center.shape
    N, _ = entity_weight.shape

    # --- tile sizing -------------------------------------------------------
    if B <= 128:
        B_pad = _round_up(B, 8)
        TB = B_pad
    else:                                  # lane-dim constraint on transposed q
        B_pad = _round_up(B, 128)
        TB = 128

    N_pad = _round_up(N, 128)              # lane-dense output tiles

    if D <= 128:                           # common case: one D tile -> entity
        D_pad = D                          # tile resident across the B sweep
        TD = D
    else:
        D_pad = _round_up(D, 128)
        TD = 128

    # Largest lane-dense TN keeping the in-kernel (TD, TB, TN) f32 temp modest
    # (fits comfortably under the default scoped VMEM on v5e/v6e/v7x).
    budget_elems = 1 << 20                 # ~4 MiB of f32
    TN = 128
    for cand in (1024, 512, 256, 128):
        if N_pad % cand == 0 and TD * TB * cand <= budget_elems:
            TN = cand
            break

    # --- padding (exact: zero D/B/N padding contributes 0 / is sliced away) -
    def pad2(x, rows, cols):
        pr, pc = rows - x.shape[0], cols - x.shape[1]
        return jnp.pad(x, ((0, pr), (0, pc))) if (pr or pc) else x

    qc_t = pad2(query_center.T, D_pad, B_pad)       # (D_pad, B_pad)
    qmax_t = pad2(query_max.T, D_pad, B_pad)
    qmin_t = pad2(query_min.T, D_pad, B_pad)
    e_t = pad2(entity_weight.T, D_pad, N_pad)       # (D_pad, N_pad)

    grid = (N_pad // TN, B_pad // TB, D_pad // TD)  # entity on the slow axis

    q_spec = pl.BlockSpec((TD, TB), lambda n, b, k: (k, b))
    e_spec = pl.BlockSpec((TD, TN), lambda n, b, k: (k, n))
    o_spec = pl.BlockSpec((TB, TN), lambda n, b, k: (b, n))

    out = pl.pallas_call(
        functools.partial(_all_entities_kernel, alpha=alpha),
        out_shape=jax.ShapeDtypeStruct((B_pad, N_pad), jnp.float32),
        grid=grid,
        in_specs=[q_spec, q_spec, q_spec, e_spec],
        out_specs=o_spec,
        scratch_shapes=[pltpu.VMEM((TB, TN), jnp.float32)],
        compiler_params=pltpu.CompilerParams(
            dimension_semantics=("parallel", "parallel", "arbitrary"),
            vmem_limit_bytes=48 * 1024 * 1024),
    )(qc_t, qmax_t, qmin_t, e_t)
    return out[:B, :N]


# ---------------------------------------------------------------------------
# Module
# ---------------------------------------------------------------------------

class Query2BoxPallas:
    """JAX/Pallas port of the PyTorch query2box module (forward pass only)."""

    def __init__(self, entity_count, relation_count, embedding_dim,
                 alpha=0.2, norm=1, init_scale=0.001, key=None):
        if key is None:
            key = jax.random.PRNGKey(0)
        k_e, k_r, k_o = jax.random.split(key, 3)
        self.E_center = init_scale * jax.random.normal(
            k_e, (entity_count, embedding_dim), dtype=jnp.float32)
        self.R_center = init_scale * jax.random.normal(
            k_r, (relation_count, embedding_dim), dtype=jnp.float32)
        self.R_offset = jax.random.uniform(
            k_o, (relation_count, embedding_dim), dtype=jnp.float32,
            minval=0.0, maxval=2.0 * init_scale)
        self.entity_count = entity_count
        self.relation_count = relation_count
        self.embedding_dim = embedding_dim
        self.alpha = float(alpha)
        # TODO(synk): only the L1 (p=1) distance norm of the reference module
        #             is implemented in the kernels.
        assert norm == 1, "only norm=1 (L1) is implemented"
        self.norm = norm

    def forward(self, s, r, o=None):
        # Embedding lookups = gathers (plain-JAX glue).
        s_center = jnp.take(self.E_center, s, axis=0)      # (B, D)
        r_center = jnp.take(self.R_center, r, axis=0)      # (B, D)
        r_offset = jnp.take(self.R_offset, r, axis=0)      # (B, D)

        if o is not None:
            o_center = jnp.take(self.E_center, o, axis=0)  # (B, D)
            return query2box_score_pairwise(
                s_center, r_center, r_offset, o_center, alpha=self.alpha)  # (B,)

        # o is None: score against every entity.
        query_center = s_center + r_center
        query_offset = jnp.maximum(r_offset, 0.0)           # relu
        query_max = query_center + query_offset
        query_min = query_center - query_offset
        return query2box_score_all_entities(
            query_center, query_max, query_min, self.E_center,
            alpha=self.alpha)                                # (B, N)


# ---------------------------------------------------------------------------
# Main
# ---------------------------------------------------------------------------

if __name__ == "__main__":
    entity_count = 64
    relation_count = 8
    embedding_dim = 32
    batch = 8
    alpha = 0.2

    key = jax.random.PRNGKey(0)
    k_model, k_s, k_r, k_o = jax.random.split(key, 4)

    model = Query2BoxPallas(entity_count, relation_count, embedding_dim,
                            alpha=alpha, norm=1, init_scale=0.001, key=k_model)

    s = jax.random.randint(k_s, (batch,), 0, entity_count, dtype=jnp.int32)
    r = jax.random.randint(k_r, (batch,), 0, relation_count, dtype=jnp.int32)
    o = jax.random.randint(k_o, (batch,), 0, entity_count, dtype=jnp.int32)

    # Mode 1: o provided -> (B,)
    score_pair = jax.block_until_ready(model.forward(s, r, o))
    # Mode 2: o is None -> (B, entity_count)
    score_all = jax.block_until_ready(model.forward(s, r, None))

    # Pure-JAX reference of the PyTorch forward.
    def ref_forward(E, Rc, Ro, s, r, o, alpha):
        s_c = E[s]; r_c = Rc[r]; r_o = Ro[r]
        qc = s_c + r_c
        qoff = jnp.maximum(r_o, 0.0)
        qmax = qc + qoff
        qmin = qc - qoff
        if o is not None:
            o_c = E[o]
        else:
            o_c = E[None, :, :]                 # (1, N, D)
            qc = qc[:, None, :]
            qmax = qmax[:, None, :]
            qmin = qmin[:, None, :]
        d_out = jnp.maximum(o_c - qmax, 0.0) + jnp.maximum(qmin - o_c, 0.0)
        d_out = jnp.sum(jnp.abs(d_out), axis=-1)
        d_in = qc - jnp.minimum(qmax, jnp.maximum(qmin, o_c))
        d_in = jnp.sum(jnp.abs(d_in), axis=-1)
        return -(d_out + alpha * d_in)

    ref_pair = ref_forward(model.E_center, model.R_center, model.R_offset,
                           s, r, o, alpha)
    ref_all = ref_forward(model.E_center, model.R_center, model.R_offset,
                          s, r, None, alpha)

    assert score_pair.shape == (batch,)
    assert score_all.shape == (batch, entity_count)
    assert jnp.allclose(score_pair, ref_pair, atol=1e-6, rtol=1e-5)
    assert jnp.allclose(score_all, ref_all, atol=1e-6, rtol=1e-5)

    print("KERNEL_OK")
</pallas_src>

<mosaic_0001>
module attributes {stable_mosaic.version = 11 : i64} {
  func.func @_pairwise_kernel(%arg0: i32, %arg1: memref<8x32xf32, #tpu.memory_space<vmem>>, %arg2: memref<8x32xf32, #tpu.memory_space<vmem>>, %arg3: memref<8x32xf32, #tpu.memory_space<vmem>>, %arg4: memref<8x32xf32, #tpu.memory_space<vmem>>, %arg5: memref<8x1xf32, #tpu.memory_space<vmem>>) attributes {dimension_semantics = [#tpu.dimension_semantics<parallel>], iteration_bounds = array<i64: 1>, scalar_prefetch = 0 : i64, scratch_operands = 0 : i64, tpu.core_type = #tpu.core_type<tc>, window_params = [{transform_indices = @transform_0, window_bounds = array<i64: 8, 32>}, {transform_indices = @transform_1, window_bounds = array<i64: 8, 32>}, {transform_indices = @transform_2, window_bounds = array<i64: 8, 32>}, {transform_indices = @transform_3, window_bounds = array<i64: 8, 32>}, {transform_indices = @transform_4, window_bounds = array<i64: 8, 1>}]} {
    %c0 = arith.constant 0 : index
    %c0_0 = arith.constant 0 : index
    %0 = vector.load %arg1[%c0, %c0_0] : memref<8x32xf32, #tpu.memory_space<vmem>>, vector<8x32xf32>
    %c0_1 = arith.constant 0 : index
    %c0_2 = arith.constant 0 : index
    %1 = vector.load %arg2[%c0_1, %c0_2] : memref<8x32xf32, #tpu.memory_space<vmem>>, vector<8x32xf32>
    %c0_3 = arith.constant 0 : index
    %c0_4 = arith.constant 0 : index
    %2 = vector.load %arg3[%c0_3, %c0_4] : memref<8x32xf32, #tpu.memory_space<vmem>>, vector<8x32xf32>
    %cst = arith.constant 0.000000e+00 : f32
    %3 = vector.broadcast %cst : f32 to vector<8x32xf32>
    %4 = arith.maximumf %2, %3 : vector<8x32xf32>
    %c0_5 = arith.constant 0 : index
    %c0_6 = arith.constant 0 : index
    %5 = vector.load %arg4[%c0_5, %c0_6] : memref<8x32xf32, #tpu.memory_space<vmem>>, vector<8x32xf32>
    %6 = arith.addf %0, %1 : vector<8x32xf32>
    %7 = arith.addf %6, %4 : vector<8x32xf32>
    %8 = arith.subf %6, %4 : vector<8x32xf32>
    %9 = arith.subf %5, %7 : vector<8x32xf32>
    %cst_7 = arith.constant 0.000000e+00 : f32
    %10 = vector.broadcast %cst_7 : f32 to vector<8x32xf32>
    %11 = arith.maximumf %9, %10 : vector<8x32xf32>
    %12 = arith.subf %8, %5 : vector<8x32xf32>
    %cst_8 = arith.constant 0.000000e+00 : f32
    %13 = vector.broadcast %cst_8 : f32 to vector<8x32xf32>
    %14 = arith.maximumf %12, %13 : vector<8x32xf32>
    %15 = arith.addf %11, %14 : vector<8x32xf32>
    %16 = arith.maximumf %8, %5 : vector<8x32xf32>
    %17 = arith.minimumf %7, %16 : vector<8x32xf32>
    %18 = arith.subf %6, %17 : vector<8x32xf32>
    %19 = math.absf %18 : vector<8x32xf32>
    %cst_9 = arith.constant 2.000000e-01 : f32
    %20 = vector.broadcast %cst_9 : f32 to vector<8x32xf32>
    %21 = arith.mulf %20, %19 : vector<8x32xf32>
    %22 = arith.addf %15, %21 : vector<8x32xf32>
    %cst_10 = arith.constant dense<0.000000e+00> : vector<8xf32>
    %23 = vector.multi_reduction <add>, %22, %cst_10 [1] : vector<8x32xf32> to vector<8xf32>
    %24 = vector.shape_cast %23 : vector<8xf32> to vector<8x1xf32>
    %cst_11 = arith.constant 0.000000e+00 : f32
    %25 = vector.broadcast %cst_11 : f32 to vector<8x1xf32>
    %26 = arith.subf %25, %24 : vector<8x1xf32>
    %c0_12 = arith.constant 0 : index
    %c0_13 = arith.constant 0 : index
    %27 = vector.load %arg5[%c0_12, %c0_13] : memref<8x1xf32, #tpu.memory_space<vmem>>, vector<8x1xf32>
    tpu.vector_store %arg5[%c0_12, %c0_13], %26 {strides = array<i32>} : memref<8x1xf32, #tpu.memory_space<vmem>>, vector<8x1xf32>,
    return
  }
  func.func @transform_0(%arg0: i32) -> (i32, i32) {
    %c0_i32 = arith.constant 0 : i32
    %c0_i32_0 = arith.constant 0 : i32
    return %arg0, %c0_i32 : i32, i32
  }
  func.func @transform_1(%arg0: i32) -> (i32, i32) {
    %c0_i32 = arith.constant 0 : i32
    %c0_i32_0 = arith.constant 0 : i32
    return %arg0, %c0_i32 : i32, i32
  }
  func.func @transform_2(%arg0: i32) -> (i32, i32) {
    %c0_i32 = arith.constant 0 : i32
    %c0_i32_0 = arith.constant 0 : i32
    return %arg0, %c0_i32 : i32, i32
  }
  func.func @transform_3(%arg0: i32) -> (i32, i32) {
    %c0_i32 = arith.constant 0 : i32
    %c0_i32_0 = arith.constant 0 : i32
    return %arg0, %c0_i32 : i32, i32
  }
  func.func @transform_4(%arg0: i32) -> (i32, i32) {
    %c0_i32 = arith.constant 0 : i32
    %c0_i32_0 = arith.constant 0 : i32
    return %arg0, %c0_i32 : i32, i32
  }
}

</mosaic_0001>

<bundles_post_ra>
// kernel: tpu_custom_call.1
= control target key start
LH: loop header
LB: loop body
LE: loop exit
PB: predicated region body
PF: predicated region fallthrough
CT: control target
= control target key end

     0   :  { %9 = vsyncpa [#allocation3], 0  ;;  %s227_s0 = inlined_call_operand.hbm [shape: f32[8,32], index: 0, kind: input, shape index: {}]   ;;  %s228_s1 = inlined_call_operand.hbm [shape: f32[8,32], index: 1, kind: input, shape index: {}]   ;;  %s229_s2 = inlined_call_operand.hbm [shape: f32[8,32], index: 2, kind: input, shape index: {}]   ;;  %s230_s3 = inlined_call_operand.vmem [shape: f32[8,32], index: 3, kind: input, shape index: {}]   ;;  %s231_s4 = inlined_call_operand.vmem [shape: f32[8,1], index: 4, kind: output, shape index: {}]  }
   0x1   :  { %10 = vsyncpa [#allocation5], 0  ;;  %s157_s15 = smov [#allocation4]   ;;  %s158_s17 = smov [#allocation2]  }
   0x2   :  { %s27_s16 = sshll.u32 %s157_s15, 4  ;;  %s17_s18 = sshll.u32 %s158_s17, 4  ;;  %s28_s16 = int_to_ptr.vmem [resolvable:$true] %s27_s16  ;;  %s18_s18 = int_to_ptr.vmem [resolvable:$true] %s17_s18 }
   0x3   :  { %s87_s21 = scalar_lea.hbm %s228_s1, 128 }
   0x4   :  { %p88_p0 = scmp.ne.s32.totalorder %s228_s1, %s87_s21  ;;  %p91_p1 = scmp.lt.u32.totalorder %s87_s21, %s228_s1 }
   0x6   :  { %p93_p2 = pnand %p91_p1, %p88_p0 }
   0x8   :  { %96 = shalt.err (!%p93_p2)
}
   0x9   :  { %s97_s26 = scalar_lea.vmem %s28_s16, 128  ;;  %p102_p4 = scmp.lt.s32.totalorder %s28_s16, %s28_s16 }
   0xa   :  { %p98_p3 = scmp.ne.s32.totalorder %s28_s16, %s97_s26  ;;  %p103_p5 = scmp.lt.s32.totalorder %s97_s26, %s97_s26 }
   0xc   :  { %p104_p6 = por %p103_p5, %p102_p4 }
   0xe   :  { %p105_p7 = pnand %p104_p6, %p98_p3 }
  0x10   :  { %108 = shalt.err (!%p105_p7)
}
  0x11   :  { %30 = dma.hbm_to_vmem [thread:$0]  %s228_s1, 128, %s28_s16, [#allocation5]  }
  0x12   :  { %s109_s5 = scalar_lea.hbm %s227_s0, 128 }
  0x13   :  { %p110_p8 = scmp.ne.s32.totalorder %s227_s0, %s109_s5  ;;  %p113_p9 = scmp.lt.u32.totalorder %s109_s5, %s227_s0 }
  0x15   :  { %p115_p10 = pnand %p113_p9, %p110_p8 }
  0x17   :  { %118 = shalt.err (!%p115_p10)
}
  0x18   :  { %s119_s10 = scalar_lea.vmem %s18_s18, 128  ;;  %p124_p12 = scmp.lt.s32.totalorder %s18_s18, %s18_s18 }
  0x19   :  { %p120_p11 = scmp.ne.s32.totalorder %s18_s18, %s119_s10  ;;  %p125_p13 = scmp.lt.s32.totalorder %s119_s10, %s119_s10 }
  0x1b   :  { %p126_p0 = por %p125_p13, %p124_p12 }
  0x1d   :  { %p127_p1 = pnand %p126_p0, %p120_p11 }
  0x1f   :  { %130 = shalt.err (!%p127_p1)
}
  0x20   :  { %20 = dma.hbm_to_vmem [thread:$0]  %s227_s0, 128, %s18_s18, [#allocation3]  }
  0x21   :  { %s159_s12 = smov [#allocation6]   ;;  %s131_s16 = scalar_lea.hbm %s229_s2, 128 }
  0x22   :  { %s37_s13 = sshll.u32 %s159_s12, 4  ;;  %p132_p2 = scmp.ne.s32.totalorder %s229_s2, %s131_s16  ;;  %s38_s13 = int_to_ptr.vmem [resolvable:$true] %s37_s13 }
  0x23   :  { %p135_p3 = scmp.lt.u32.totalorder %s131_s16, %s229_s2 }
  0x25   :  { %p137_p4 = pnand %p135_p3, %p132_p2 }
  0x27   :  { %140 = shalt.err (!%p137_p4)
}
  0x28   :  { %s141_s22 = scalar_lea.vmem %s38_s13, 128  ;;  %p146_p6 = scmp.lt.s32.totalorder %s38_s13, %s38_s13 }
  0x29   :  { %p142_p5 = scmp.ne.s32.totalorder %s38_s13, %s141_s22  ;;  %p147_p7 = scmp.lt.s32.totalorder %s141_s22, %s141_s22 }
  0x2b   :  { %p148_p8 = por %p147_p7, %p146_p6 }
  0x2d   :  { %p149_p9 = pnand %p148_p8, %p142_p5 }
  0x2f   :  { %152 = shalt.err (!%p149_p9)
}
  0x30   :  { %40 = dma.hbm_to_vmem [thread:$0]  %s229_s2, 128, %s38_s13, [#allocation5]  }
  0x31   :  { %153 = dma.done.wait [#allocation3], 128  }
  0x32   :  { %154 = vsyncadd [#allocation3], 4294967168 }
  0x33   :  { %155 = dma.done.wait [#allocation5], 256  }
  0x34   :  { %156 = vsyncadd [#allocation5], 4294967040  ;;  %v52_v0 = vld [vmem:[#allocation2] sm:$0xff]  ;;  %v53_v1 = vld [vmem:[#allocation4] sm:$0xff]  ;;  %vm71_vm0 = vcmask 261120   ;;  %vm76_vm1 = vcmask 7168  }
  0x35   :  { %v54_v2 = vld [vmem:[#allocation6] sm:$0xff]  ;;  %v57_v4 = vadd.f32 %v53_v1, %v52_v0  ;;  %v56_v5 = vld [vmem:[%s230_s3] sm:$0xff] }
  0x36   :  { %v55_v3 = vmax.f32 %v54_v2, 0.0 }
  0x38   :  { %v58_v6 = vadd.f32 %v57_v4, %v55_v3  ;;  %v59_v7 = vsub.f32 %v57_v4, %v55_v3 }
  0x3a   :  { %v60_v8 = vsub.f32 %v56_v5, %v58_v6  ;;  %v62_v9 = vsub.f32 %v59_v7, %v56_v5  ;;  %v65_v10 = vmax.f32 %v59_v7, %v56_v5 }
  0x3c   :  { %v61_v11 = vmax.f32 %v60_v8, 0.0  ;;  %v63_v12 = vmax.f32 %v62_v9, 0.0  ;;  %v66_v13 = vmin.f32 %v58_v6, %v65_v10 }
  0x3e   :  { %v67_v14 = vsub.f32 %v57_v4, %v66_v13  ;;  %v64_v15 = vadd.f32 %v63_v12, %v61_v11 }
  0x40   :  { %v68_v16 = vand.u32 2147483647, %v67_v14 }
  0x42   :  { %v69_v17 = vmul.f32 0.2, %v68_v16 }
  0x44   :  { %v70_v18 = vadd.f32 %v69_v17, %v64_v15 }
  0x46   :  { %v72_v19 = vsel %vm71_vm0, %v70_v18, 0.0 }
  0x47   :  { %73 = vadd.xlane.f32.xlu0 %v72_v19 }
  0xd4   :  { %v74_v20 = vpop.xlane.xlu0 %73 }
  0xd5   :  { %v75_v21 = vsub.f32 0.0, %v74_v20 }
  0xd7   :  { %77 = vst.msk [vmem:[%s231_s4] sm:$0xff] %vm76_vm1, %v75_v21 }
  0xd8   :  { %82 = vsyncpa [#allocation3], 1 }
  0xd9   :  { %83 = vsyncpa [#allocation5], 1 }

</bundles_post_ra>
